<compile_context>
chip_gen: v7x
topology: tpu7x:2x2x1
jax: 0.10.0
libtpu: 0.0.40
codegen_flags: <defaults>
</compile_context>

<pallas_src>
import functools
import math

import jax
import jax.numpy as jnp
from jax.experimental import pallas as pl
from jax.experimental.pallas import tpu as pltpu


def _pe_halves_kernel(div_ref, o_ref):
    """Fill one row-tile of the sinusoidal table.

    div_ref: (1, d_half) f32          -- precomputed div_term (exp hoisted out).
    o_ref:   (2, tile_seq, d_half) f32 -- [0] = sin half, [1] = cos half.
    """
    _, tile_seq, _ = o_ref.shape

    # Absolute position index for every row of this tile, as a (tile_seq, 1)
    # column (rank-1; no full-tile iota / int-div / mod needed).
    row = jax.lax.broadcasted_iota(jnp.int32, (tile_seq, 1), 0)
    pos = (row + pl.program_id(0) * tile_seq).astype(jnp.float32)

    # Half-width angles: one frequency per (sin, cos) pair.
    angle = pos * div_ref[...]            # (tile_seq, d_half)

    o_ref[0] = jnp.sin(angle)             # -> even output columns
    o_ref[1] = jnp.cos(angle)             # -> odd  output columns


def _choose_tile_seq(seq_len, d_model):
    """Pick a large, VMEM-safe row tile; keep >=2 grid steps when possible."""
    if seq_len % 8 != 0:
        return seq_len                    # full-dim escape of the (8,128) rule
    # Bytes-aware cap: one output block (2 * tile * d_half * 4B = tile*d_model*4B)
    # <= ~4 MiB, so the double-buffered output stays far below v7x's 64 MiB VMEM.
    cap_rows = max(8, ((4 * 1024 * 1024) // (4 * d_model)) // 8 * 8)
    tile = min(seq_len, 512, cap_rows)
    if tile >= seq_len and seq_len >= 16:
        # Keep a >=2-step "parallel" grid so v7x's two TensorCores both get rows.
        tile = max(8, (seq_len // 2) // 8 * 8)
    return tile


@functools.lru_cache(maxsize=32)
def _pe_table(seq_len: int, d_model: int):
    """Build the (1, seq_len, d_model) float32 table once per shape."""
    assert d_model % 2 == 0, "d_model must be even (as in the PyTorch module)"
    d_half = d_model // 2

    # div_term[k] = exp(2k * -(ln(10000)/d_model))  -- hoisted out of the kernel.
    div_term = jnp.exp(
        jnp.arange(0, d_model, 2, dtype=jnp.float32)
        * jnp.float32(-math.log(10000.0) / d_model)
    ).reshape(1, d_half)

    tile_seq = _choose_tile_seq(seq_len, d_model)
    grid = (pl.cdiv(seq_len, tile_seq),)

    halves = pl.pallas_call(
        _pe_halves_kernel,
        out_shape=jax.ShapeDtypeStruct((2, seq_len, d_half), jnp.float32),
        grid_spec=pltpu.PrefetchScalarGridSpec(
            num_scalar_prefetch=0,
            grid=grid,
            in_specs=[pl.BlockSpec((1, d_half), lambda i: (0, 0))],
            out_specs=pl.BlockSpec((2, tile_seq, d_half), lambda i: (0, i, 0)),
        ),
        compiler_params=pltpu.CompilerParams(
            dimension_semantics=("parallel",),
        ),
        cost_estimate=pl.CostEstimate(
            flops=2 * seq_len * d_half,              # pos * div_term multiplies
            transcendentals=2 * seq_len * d_half,    # one sin or cos per element
            bytes_accessed=2 * seq_len * d_half * 4 + d_half * 4,
        ),
    )(div_term)

    # One-time even/odd interleave in XLA (amortized by the cache):
    # pe[p, 2k] = sin, pe[p, 2k+1] = cos.
    pe = jnp.moveaxis(halves, 0, -1).reshape(seq_len, d_model)
    return pe[None, :, :]                # matches pe.unsqueeze(0)[:, :seq_len]


def positional_embedding(x, d_model, max_len=512):
    """Pallas equivalent of PositionalEmbedding.forward.

    x: array of shape (batch, seq_len, ...) -- only seq_len = x.shape[1] is used.
    Returns: (1, seq_len, d_model) float32 positional table.
    """
    seq_len = x.shape[1]
    if seq_len > max_len:
        raise ValueError(f"seq_len={seq_len} exceeds max_len={max_len}")
    return _pe_table(seq_len, d_model)


def _reference_pe(seq_len, d_model):
    # pure-JAX reference mirroring the PyTorch __init__ construction
    position = jnp.arange(seq_len, dtype=jnp.float32)[:, None]
    div_term = jnp.exp(
        jnp.arange(0, d_model, 2, dtype=jnp.float32)
        * (-math.log(10000.0) / d_model)
    )
    pe = jnp.zeros((seq_len, d_model), jnp.float32)
    pe = pe.at[:, 0::2].set(jnp.sin(position * div_term))
    pe = pe.at[:, 1::2].set(jnp.cos(position * div_term))
    return pe[None]


if __name__ == "__main__":
    key = jax.random.PRNGKey(0)

    # Small case (matches the module's interface; x only supplies seq_len).
    batch, seq_len, d_model = 2, 8, 32
    x = jax.random.normal(key, (batch, seq_len, d_model), dtype=jnp.float32)
    out = jax.block_until_ready(positional_embedding(x, d_model))
    ref = _reference_pe(seq_len, d_model)
    assert out.shape == (1, seq_len, d_model), out.shape
    assert out.dtype == jnp.float32
    assert jnp.allclose(out, ref, atol=1e-5, rtol=1e-5)

    # Larger case: exercises the multi-step parallel grid and lane-dense stores.
    seq_len2, d_model2 = 512, 256
    x2 = jnp.zeros((batch, seq_len2, d_model2), dtype=jnp.float32)
    out2 = jax.block_until_ready(positional_embedding(x2, d_model2))
    ref2 = _reference_pe(seq_len2, d_model2)
    assert out2.shape == (1, seq_len2, d_model2), out2.shape
    assert jnp.allclose(out2, ref2, atol=1e-4, rtol=1e-5)

    print("KERNEL_OK")
</pallas_src>

<mosaic_0001>
module attributes {stable_mosaic.version = 11 : i64} {
  func.func @_pe_halves_kernel(%arg0: i32, %arg1: memref<1x16xf32, #tpu.memory_space<vmem>>, %arg2: memref<2x8x16xf32, #tpu.memory_space<vmem>>) attributes {dimension_semantics = [#tpu.dimension_semantics<parallel>], iteration_bounds = array<i64: 1>, scalar_prefetch = 0 : i64, scratch_operands = 0 : i64, tpu.core_type = #tpu.core_type<tc>, window_params = [{pipeline_mode = #tpu.pipeline_mode<synchronous>, transform_indices = @transform_0, window_bounds = array<i64: 1, 16>}, {transform_indices = @transform_1, window_bounds = array<i64: 2, 8, 16>}]} {
    %0 = tpu.iota {dimensions = array<i32: 0>} : vector<8x1xi32>
    %c8_i32 = arith.constant 8 : i32
    %1 = arith.muli %arg0, %c8_i32 : i32
    %2 = vector.broadcast %1 : i32 to vector<8x1xi32>
    %3 = arith.addi %0, %2 : vector<8x1xi32>
    %4 = arith.sitofp %3 : vector<8x1xi32> to vector<8x1xf32>
    %c0 = arith.constant 0 : index
    %c0_0 = arith.constant 0 : index
    %5 = vector.load %arg1[%c0, %c0_0] : memref<1x16xf32, #tpu.memory_space<vmem>>, vector<1x16xf32>
    %6 = vector.broadcast %4 : vector<8x1xf32> to vector<8x16xf32>
    %7 = vector.broadcast %5 : vector<1x16xf32> to vector<8x16xf32>
    %8 = arith.mulf %6, %7 : vector<8x16xf32>
    %9 = math.sin %8 : vector<8x16xf32>
    %c0_1 = arith.constant 0 : index
    %c0_2 = arith.constant 0 : index
    %c0_3 = arith.constant 0 : index
    %10 = vector.load %arg2[%c0_1, %c0_2, %c0_3] : memref<2x8x16xf32, #tpu.memory_space<vmem>>, vector<1x8x16xf32>
    %11 = vector.shape_cast %10 : vector<1x8x16xf32> to vector<8x16xf32>
    %12 = vector.shape_cast %9 : vector<8x16xf32> to vector<1x8x16xf32>
    tpu.vector_store %arg2[%c0_1, %c0_2, %c0_3], %12 {strides = array<i32>} : memref<2x8x16xf32, #tpu.memory_space<vmem>>, vector<1x8x16xf32>,
    %13 = math.cos %8 : vector<8x16xf32>
    %c1 = arith.constant 1 : index
    %c0_4 = arith.constant 0 : index
    %c0_5 = arith.constant 0 : index
    %14 = vector.load %arg2[%c1, %c0_4, %c0_5] : memref<2x8x16xf32, #tpu.memory_space<vmem>>, vector<1x8x16xf32>
    %15 = vector.shape_cast %14 : vector<1x8x16xf32> to vector<8x16xf32>
    %16 = vector.shape_cast %13 : vector<8x16xf32> to vector<1x8x16xf32>
    tpu.vector_store %arg2[%c1, %c0_4, %c0_5], %16 {strides = array<i32>} : memref<2x8x16xf32, #tpu.memory_space<vmem>>, vector<1x8x16xf32>,
    return
  }
  func.func @transform_0(%arg0: i32) -> (i32, i32) {
    %c0_i32 = arith.constant 0 : i32
    %c0_i32_0 = arith.constant 0 : i32
    %c0_i32_1 = arith.constant 0 : i32
    return %c0_i32, %c0_i32_0 : i32, i32
  }
  func.func @transform_1(%arg0: i32) -> (i32, i32, i32) {
    %c0_i32 = arith.constant 0 : i32
    %c0_i32_0 = arith.constant 0 : i32
    %c0_i32_1 = arith.constant 0 : i32
    return %c0_i32, %arg0, %c0_i32_0 : i32, i32, i32
  }
}

</mosaic_0001>

<bundles_post_ra>
// kernel: tpu_custom_call.1
= control target key start
LH: loop header
LB: loop body
LE: loop exit
PB: predicated region body
PF: predicated region fallthrough
CT: control target
= control target key end

     0   :  { %6 = vsyncpa [#allocation3], 0  ;;  %s403_s0 = inlined_call_operand.hbm [shape: f32[1,16], index: 0, kind: input, shape index: {}]   ;;  %s404_s1 = inlined_call_operand.hbm [shape: f32[2,8,16], index: 1, kind: output, shape index: {}]  }
   0x1   :  { %7 = vsyncpa [#allocation4], 0  ;;  %s338_s6 = smov [#allocation2]   ;;  %s290_s10 = scalar_lea.hbm %s403_s0, 16 }
   0x2   :  { %s14_s7 = sshll.u32 %s338_s6, 4  ;;  %p291_p0 = scmp.ne.s32.totalorder %s403_s0, %s290_s10  ;;  %s15_s7 = int_to_ptr.vmem [resolvable:$true] %s14_s7 }
   0x3   :  { %p294_p1 = scmp.lt.u32.totalorder %s290_s10, %s403_s0 }
   0x5   :  { %p296_p2 = pnand %p294_p1, %p291_p0 }
   0x7   :  { %299 = shalt.err (!%p296_p2)
}
   0x8   :  { %s300_s15 = scalar_lea.vmem %s15_s7, 16  ;;  %s304_s16 = scalar_lea.vmem %s15_s7, 32 }
   0x9   :  { %p301_p3 = scmp.ne.s32.totalorder %s15_s7, %s300_s15  ;;  %p305_p4 = scmp.lt.s32.totalorder %s15_s7, %s15_s7 }
   0xa   :  { %p306_p5 = scmp.lt.s32.totalorder %s304_s16, %s300_s15 }
   0xc   :  { %p307_p6 = por %p306_p5, %p305_p4 }
   0xe   :  { %p308_p7 = pnand %p307_p6, %p301_p3 }
  0x10   :  { %311 = shalt.err (!%p308_p7)
}
  0x11   :  { %17 = dma.hbm_to_vmem [thread:$0]  %s403_s0, 16, %s15_s7, [#allocation3]  }
  0x12   :  { %334 = dma.done.wait [#allocation3], 16  }
  0x13   :  { %335 = vsyncadd [#allocation3], 4294967280  ;;  %v21_v0 = vlaneseq  ;;  %v263_v3 = vld [vmem:[#allocation2] ss:$0 sm:$0xff]  ;;  %v339_v16 = vmov 683565275  }
  0x14   :  { %v340_v18 = vmov 2475754826   ;;  %v341_v20 = vmov 2131351028   ;;  %v342_v22 = vmov 2102212464  }
  0x15   :  { %v22_v1 = vshrl.u32 %v21_v0, 7  ;;  %v343_v24 = vmov 920167782   ;;  %v344_v31 = vmov 1326507024   ;;  %s345_s0 = smov [#allocation5]  }
  0x16   :  { %s251_s19 = sshll.u32 %s345_s0, 4  ;;  %s252_s19 = int_to_ptr.vmem [resolvable:$true] %s251_s19 }
  0x17   :  { %v26_v2 = vcvt.s32.f32 %v22_v1  ;;  %s312_s20 = scalar_lea.vmem %s252_s19, 256  ;;  %p317_p9 = scmp.lt.s32.totalorder %s252_s19, %s252_s19 }
  0x18   :  { %p313_p8 = scmp.ne.s32.totalorder %s252_s19, %s312_s20  ;;  %p318_p10 = scmp.lt.s32.totalorder %s312_s20, %s312_s20 }
  0x19   :  { %v370_v4 = vmul.f32 %v263_v3, %v26_v2 }
  0x1a   :  { %p319_p11 = por %p318_p10, %p317_p9 }
  0x1b   :  { %v38_v5 = vand.u32 2139095040, %v370_v4  ;;  %v35_v7 = vand.u32 2147483647, %v370_v4  ;;  %vm37_vm7 = vcmp.lt.s32.totalorder %v370_v4, 0  ;;  %vm127_vm15 = vweird.f32 %v370_v4 }
  0x1c   :  { %p320_p12 = pnand %p319_p11, %p313_p8 }
  0x1d   :  { %v39_v6 = vshrl.u32 %v38_v5, 23  ;;  %v42_v10 = vand.u32 8388607, %v35_v7  ;;  %vm36_vm8 = vcmp.le.f32.partialorder %v35_v7, 0.7853982 }
  0x1f   :  { %v264_v8 = vadd.s32 4294967169, %v39_v6  ;;  %v43_v13 = vor.u32 8388608, %v42_v10 }
  0x21   :  { %v45_v9 = vadd.s32 1, %v264_v8  ;;  %v83_v33 = vshll.u32 %v43_v13, 8 }
  0x23   :  { %vm46_vm0 = vcmp.gt.s32.totalorder %v45_v9, 0 }
  0x24   :  { %v47_v11 = vsel %vm46_vm0, %v45_v9, 0  ;;  %vm139_vm0 = vcmask 130048  }
  0x25   :  { %v49_v12 = vand.u32 31, %v47_v11  ;;  %v48_v14 = vshrl.u32 %v47_v11, 5 }
  0x27   :  { %v50_v15 = vsub.s32 32, %v49_v12  ;;  %v52_v17 = vshll.u32 %v339_v16, %v49_v12  ;;  %v55_v19 = vshll.u32 %v340_v18, %v49_v12  ;;  %v58_v21 = vshll.u32 %v341_v20, %v49_v12 }
  0x28   :  { %v61_v23 = vshll.u32 %v342_v22, %v49_v12  ;;  %v64_v25 = vshll.u32 %v343_v24, %v49_v12  ;;  %vm67_vm1 = vcmp.lt.s32.totalorder %v48_v14, 1  ;;  %vm70_vm2 = vcmp.lt.s32.totalorder %v48_v14, 4 }
  0x29   :  { %v51_v26 = vshrl.u32 %v339_v16, %v50_v15  ;;  %v53_v27 = vshrl.u32 %v340_v18, %v50_v15  ;;  %v56_v28 = vshrl.u32 %v341_v20, %v50_v15  ;;  %v59_v29 = vshrl.u32 %v342_v22, %v50_v15 }
  0x2a   :  { %v62_v30 = vshrl.u32 %v343_v24, %v50_v15  ;;  %v65_v32 = vshrl.u32 %v344_v31, %v50_v15  ;;  %vm68_vm3 = vcmp.lt.s32.totalorder %v48_v14, 2  ;;  %vm69_vm4 = vcmp.lt.s32.totalorder %v48_v14, 3 }
  0x2b   :  { %v54_v34 = vor.u32 %v53_v27, %v52_v17  ;;  %v57_v35 = vor.u32 %v56_v28, %v55_v19  ;;  %v60_v36 = vor.u32 %v59_v29, %v58_v21 }
  0x2c   :  { %v63_v37 = vor.u32 %v62_v30, %v61_v23  ;;  %v66_v38 = vor.u32 %v65_v32, %v64_v25 }
  0x2d   :  { %v71_v39 = vsel %vm67_vm1, %v51_v26, %v54_v34  ;;  %v72_v40 = vsel %vm70_vm2, %v60_v36, 2102212464  ;;  %v75_v41 = vsel %vm67_vm1, %v54_v34, %v57_v35  ;;  %v79_v42 = vsel %vm67_vm1, %v57_v35, %v60_v36 }
  0x2e   :  { %v73_v43 = vsel %vm69_vm4, %v57_v35, %v72_v40  ;;  %v76_v44 = vsel %vm70_vm2, %v63_v37, 920167782  ;;  %v80_v45 = vsel %vm70_vm2, %v66_v38, 1326507024 }
  0x2f   :  { %v77_v46 = vsel %vm69_vm4, %v60_v36, %v76_v44  ;;  %v81_v47 = vsel %vm69_vm4, %v63_v37, %v80_v45  ;;  %v74_v48 = vsel %vm68_vm3, %v71_v39, %v73_v43 }
  0x30   :  { %v78_v49 = vsel %vm68_vm3, %v75_v41, %v77_v46  ;;  %v82_v50 = vsel %vm68_vm3, %v79_v42, %v81_v47  ;;  %v90_v55 = vmul.u32 %v83_v33, %v74_v48 }
  0x31   :  { %v376_v51 = vmul.u32.u64.low %v83_v33, %v82_v50  ;;  %v377_v52 = vmul.u32.u64.high %v83_v33, %v82_v50, %v376_v51  ;;  %v379_v53 = vmul.u32.u64.low %v83_v33, %v78_v49  ;;  %v380_v54 = vmul.u32.u64.high %v83_v33, %v78_v49, %v379_v53 }
  0x33   :  { %vm92_vm5 = vc.u32 %v377_v52, %v379_v53  ;;  %v93_v56 = vadd.s32 1, %v380_v54  ;;  %v91_v3 = vadd.s32 %v379_v53, %v377_v52 }
  0x35   :  { %v94_v57 = vsel %vm92_vm5, %v93_v56, %v380_v54 }
  0x36   :  { %v95_v58 = vadd.s32 %v94_v57, %v90_v55 }
  0x38   :  { %v96_v59 = vadd.s32 536870912, %v95_v58 }
  0x3a   :  { %v97_v60 = vshrl.u32 %v96_v59, 30 }
  0x3c   :  { %v98_v61 = vshll.u32 %v97_v60, 30  ;;  %v121_v17 = vsub.s32 4, %v97_v60 }
  0x3e   :  { %v99_v62 = vsub.s32 %v95_v58, %v98_v61  ;;  %v122_v20 = vsel %vm37_vm7, %v121_v17, %v97_v60 }
  0x3f   :  { %v124_v23 = vsel %vm36_vm8, 0, %v122_v20 }
  0x40   :  { %v101_v63 = vsub.s32 0, %v99_v62  ;;  %v128_v24 = vadd.s32 3, %v124_v23  ;;  %v234_v26 = vand.u32 3, %v124_v23 }
  0x42   :  { %v265_v0 = vmin.u32 %v101_v63, %v99_v62  ;;  %v129_v25 = vand.u32 3, %v128_v24  ;;  %vm239_vm10 = vcmp.eq.s32.totalorder %v234_v26, 2  ;;  %vm236_vm12 = vcmp.eq.s32.totalorder %v234_v26, 0 }
  0x43   :  { %vm235_vm14 = vcmp.lt.s32.totalorder %v234_v26, 2 }
  0x44   :  { %v103_v1 = vclz %v265_v0  ;;  %vm134_vm9 = vcmp.eq.s32.totalorder %v129_v25, 2  ;;  %vm131_vm11 = vcmp.eq.s32.totalorder %v129_v25, 0  ;;  %vm130_vm13 = vcmp.lt.s32.totalorder %v129_v25, 2 }
  0x46   :  { %v266_v2 = vadd.s32 4294967294, %v103_v1 }
  0x48   :  { %vm267_vm6 = vcmp.lt.s32.totalorder %v266_v2, 0 }
  0x49   :  { %v106_v5 = vsel %vm267_vm6, 0, %v266_v2 }
  0x4a   :  { %v107_v6 = vsub.s32 32, %v106_v5  ;;  %v108_v8 = vshll.u32 %v99_v62, %v106_v5  ;;  %v111_v9 = vsub.s32 4294967266, %v106_v5 }
  0x4c   :  { %v109_v10 = vshrl.u32 %v91_v3, %v107_v6  ;;  %v112_v11 = vadd.s32 127, %v111_v9 }
  0x4e   :  { %v110_v12 = vor.u32 %v109_v10, %v108_v8  ;;  %v113_v13 = vshll.u32 %v112_v11, 23 }
  0x50   :  { %v114_v14 = vor.u32 4788187, %v113_v13  ;;  %v117_v15 = vcvt.s32.f32 %v110_v12 }
  0x52   :  { %v115_v16 = vand.u32 2147483647, %v114_v14 }
  0x54   :  { %v118_v18 = vmul.f32 %v117_v15, %v115_v16 }
  0x56   :  { %v119_v19 = vxor.u32 2147483648, %v118_v18 }
  0x58   :  { %v120_v21 = vsel %vm37_vm7, %v119_v19, %v118_v18 }
  0x59   :  { %v123_v22 = vsel %vm36_vm8, %v370_v4, %v120_v21 }
  0x5a   :  { %286 = vcosq.f32 %v123_v22 }
  0x5b   :  { %288 = vsinq.f32 %v123_v22 }
  0x64   :  { %v287_v27 = vpop.eup %286 }
  0x65   :  { %v289_v28 = vpop.eup %288  ;;  %v135_v29 = vxor.u32 2147483648, %v287_v27 }
  0x66   :  { %v132_v7 = vxor.u32 2147483648, %v289_v28 }
  0x67   :  { %v136_v30 = vsel %vm134_vm9, %v135_v29, %v289_v28  ;;  %v241_v31 = vsel %vm239_vm10, %v135_v29, %v289_v28 }
  0x68   :  { %v133_v32 = vsel %vm131_vm11, %v287_v27, %v132_v7  ;;  %v238_v33 = vsel %vm236_vm12, %v287_v27, %v132_v7 }
  0x69   :  { %v137_v34 = vsel %vm130_vm13, %v133_v32, %v136_v30  ;;  %v242_v35 = vsel %vm235_vm14, %v238_v33, %v241_v31 }
  0x6a   :  { %v138_v36 = vsel %vm127_vm15, nan, %v137_v34  ;;  %v243_v37 = vsel %vm127_vm15, nan, %v242_v35 }
  0x6b   :  { %140 = vst.msk [vmem:[#allocation5] sm:$0xff] %vm139_vm0, %v138_v36  ;;  %245 = vst.msk [vmem:[#allocation5 + $0x8] sm:$0xff] %vm139_vm0, %v243_v37 }
  0x6c   :  { %323 = shalt.err (!%p320_p12)
}
  0x6d   :  { %s324_s23 = scalar_lea.hbm %s404_s1, 256 }
  0x6e   :  { %p325_p13 = scmp.ne.s32.totalorder %s404_s1, %s324_s23  ;;  %p328_p0 = scmp.lt.u32.totalorder %s324_s23, %s404_s1 }
  0x70   :  { %p330_p1 = pnand %p328_p0, %p325_p13 }
  0x72   :  { %333 = shalt.err (!%p330_p1)
}
  0x73   :  { %s346_s28 = smov 128   ;;  %s347_s29 = smov 8  }
  0x74   :  { %257 = dma.vmem_to_hbm [thread:$0]  %s252_s19, 256, %s404_s1, [#allocation4], %s346_s28, %s346_s28, %s347_s29  }
  0x75   :  { %336 = dma.done.wait [#allocation4], 256  }
  0x76   :  { %337 = vsyncadd [#allocation4], 4294967040 }
  0x77   :  { %261 = vsyncpa [#allocation3], 1 }
  0x78   :  { %262 = vsyncpa [#allocation4], 1 }

</bundles_post_ra>
